<compile_context>
chip_gen: v7x
topology: tpu7x:2x2x1
jax: 0.10.0
libtpu: 0.0.40
codegen_flags: <defaults>
</compile_context>

<pallas_src>
import functools

import jax
import jax.numpy as jnp
from jax.experimental import pallas as pl
from jax.experimental.pallas import tpu as pltpu

BN_EPS = 1e-5


def _relu_bn(h, gamma, beta):
    """ReLU then BatchNorm1d (training mode, biased variance), fused affine."""
    h = jnp.maximum(h, 0.0)
    mean = jnp.mean(h, axis=0, keepdims=True)
    # Single-pass variance; activations are non-negative post-ReLU so the
    # E[h^2] - E[h]^2 form is numerically safe in f32.
    var = jnp.mean(h * h, axis=0, keepdims=True) - mean * mean
    scale = gamma * jax.lax.rsqrt(var + BN_EPS)
    shift = beta - mean * scale
    return h * scale + shift


def mlp_kernel(x_ref, w1_ref, w2_ref, w3_ref, w4_ref, vec_ref, o_ref):
    # Packed vector table (f32, [16, 128]):
    #   row 0: b1[128]   row 1: g1[128]   row 2: be1[128]
    #   row 3: b2[:64]   row 4: g2[:64]   row 5: be2[:64]
    #   row 6: b3[:32]   row 7: g3[:32]   row 8: be3[:32]
    #   row 9: b4 zero-padded to 128      rows 10..15: padding
    vec = vec_ref[...]
    b1, g1, be1 = vec[0:1, :], vec[1:2, :], vec[2:3, :]
    b2, g2, be2 = vec[3:4, :64], vec[4:5, :64], vec[5:6, :64]
    b3, g3, be3 = vec[6:7, :32], vec[7:8, :32], vec[8:9, :32]
    b4 = vec[9:10, :]

    # Linear(input_size, 128) -> ReLU -> BatchNorm1d(128)
    h = jnp.dot(x_ref[...], w1_ref[...], preferred_element_type=jnp.float32) + b1
    h = _relu_bn(h, g1, be1)

    # Linear(128, 64) -> ReLU -> BatchNorm1d(64)
    h = jnp.dot(h.astype(jnp.bfloat16), w2_ref[...],
                preferred_element_type=jnp.float32) + b2
    h = _relu_bn(h, g2, be2)

    # Linear(64, 32) -> ReLU -> BatchNorm1d(32)
    h = jnp.dot(h.astype(jnp.bfloat16), w3_ref[...],
                preferred_element_type=jnp.float32) + b3
    h = _relu_bn(h, g3, be3)

    # Linear(32, 10), computed into a lane-dense 128-wide padded block.
    out = jnp.dot(h.astype(jnp.bfloat16), w4_ref[...],
                  preferred_element_type=jnp.float32) + b4
    o_ref[...] = out


def init_params(key, input_size):
    """Deterministic parameter init (PyTorch-style uniform(-1/sqrt(fan_in), +))."""
    dims = [(input_size, 128), (128, 64), (64, 32), (32, 10)]
    params = {}
    keys = jax.random.split(key, 2 * len(dims))
    for i, (fin, fout) in enumerate(dims):
        bound = 1.0 / (fin ** 0.5)
        # stored as [in, out] so the kernel computes x @ W
        params[f"w{i+1}"] = jax.random.uniform(
            keys[2 * i], (fin, fout), jnp.float32, -bound, bound)
        params[f"b{i+1}"] = jax.random.uniform(
            keys[2 * i + 1], (1, fout), jnp.float32, -bound, bound)
    # BatchNorm affine params: PyTorch default init weight=1, bias=0
    for i, d in enumerate([128, 64, 32]):
        params[f"g{i+1}"] = jnp.ones((1, d), jnp.float32)
        params[f"be{i+1}"] = jnp.zeros((1, d), jnp.float32)
    return params


def pack_params(params):
    """One-time packing: bf16 weights (w4 lane-padded to 128 cols) and a single
    f32 [16, 128] table holding all biases / BN gammas / BN betas."""
    w1 = params["w1"].astype(jnp.bfloat16)
    w2 = params["w2"].astype(jnp.bfloat16)
    w3 = params["w3"].astype(jnp.bfloat16)
    w4 = (jnp.zeros((32, 128), jnp.float32)
          .at[:, :10].set(params["w4"])
          .astype(jnp.bfloat16))

    vec = jnp.zeros((16, 128), jnp.float32)

    def put(v, row, arr):
        n = arr.shape[-1]
        return v.at[row, :n].set(arr.reshape(-1))

    vec = put(vec, 0, params["b1"])
    vec = put(vec, 1, params["g1"])
    vec = put(vec, 2, params["be1"])
    vec = put(vec, 3, params["b2"])
    vec = put(vec, 4, params["g2"])
    vec = put(vec, 5, params["be2"])
    vec = put(vec, 6, params["b3"])
    vec = put(vec, 7, params["g3"])
    vec = put(vec, 8, params["be3"])
    vec = put(vec, 9, params["b4"])

    return {"w1": w1, "w2": w2, "w3": w3, "w4": w4, "vec": vec}


@functools.partial(jax.jit, static_argnames=())
def baseline_linear1d_forward(x, packed):
    B = x.shape[0]
    x_bf16 = x.astype(jnp.bfloat16)
    args = (x_bf16, packed["w1"], packed["w2"], packed["w3"],
            packed["w4"], packed["vec"])
    vmem_spec = pl.BlockSpec(memory_space=pltpu.MemorySpace.VMEM)
    out_padded = pl.pallas_call(
        mlp_kernel,
        out_shape=jax.ShapeDtypeStruct((B, 128), jnp.float32),
        in_specs=[vmem_spec] * len(args),
        out_specs=vmem_spec,
    )(*args)
    # Columns 10..127 are exact zeros (zero-padded w4/b4); slice them away.
    return out_padded[:, :10]


def reference_forward(x, params):
    """Pure-JAX reference with the same mixed precision (bf16 matmul operands,
    f32 accumulation, f32 BN math)."""
    def dot_bf16(a, w):
        return jnp.dot(a.astype(jnp.bfloat16), w.astype(jnp.bfloat16),
                       preferred_element_type=jnp.float32)

    h = x
    for i, has_bn in zip(range(1, 5), (True, True, True, False)):
        h = dot_bf16(h, params[f"w{i}"]) + params[f"b{i}"]
        if has_bn:
            h = jnp.maximum(h, 0.0)
            mean = jnp.mean(h, axis=0, keepdims=True)
            var = jnp.mean((h - mean) ** 2, axis=0, keepdims=True)
            h = ((h - mean) * jax.lax.rsqrt(var + BN_EPS)
                 * params[f"g{i}"] + params[f"be{i}"])
    return h


if __name__ == "__main__":
    INPUT_SIZE = 32
    BATCH = 8

    key = jax.random.PRNGKey(0)
    kx, kp = jax.random.split(key)
    x = jax.random.normal(kx, (BATCH, INPUT_SIZE), jnp.float32)
    params = init_params(kp, INPUT_SIZE)
    packed = jax.tree_util.tree_map(lambda a: a, pack_params(params))

    out = baseline_linear1d_forward(x, packed)
    out = jax.block_until_ready(out)

    ref = reference_forward(x, params)
    assert out.shape == (BATCH, 10)
    assert jnp.allclose(out, ref, atol=2e-2, rtol=2e-2), "mismatch vs reference"

    print("KERNEL_OK")
</pallas_src>

<mosaic_0001>
module attributes {stable_mosaic.version = 11 : i64} {
  func.func @mlp_kernel(%arg0: memref<8x32xbf16, #tpu.memory_space<vmem>>, %arg1: memref<32x128xbf16, #tpu.memory_space<vmem>>, %arg2: memref<128x64xbf16, #tpu.memory_space<vmem>>, %arg3: memref<64x32xbf16, #tpu.memory_space<vmem>>, %arg4: memref<32x128xbf16, #tpu.memory_space<vmem>>, %arg5: memref<16x128xf32, #tpu.memory_space<vmem>>, %arg6: memref<8x128xf32, #tpu.memory_space<vmem>>) attributes {dimension_semantics = [], scalar_prefetch = 0 : i64, scratch_operands = 0 : i64, tpu.core_type = #tpu.core_type<tc>} {
    %c0 = arith.constant 0 : index
    %c0_0 = arith.constant 0 : index
    %0 = vector.load %arg5[%c0, %c0_0] : memref<16x128xf32, #tpu.memory_space<vmem>>, vector<16x128xf32>
    %1 = vector.extract_strided_slice %0 {offsets = [0, 0], sizes = [1, 128], strides = [1, 1]} : vector<16x128xf32> to vector<1x128xf32>
    %2 = vector.extract_strided_slice %0 {offsets = [1, 0], sizes = [1, 128], strides = [1, 1]} : vector<16x128xf32> to vector<1x128xf32>
    %3 = vector.extract_strided_slice %0 {offsets = [2, 0], sizes = [1, 128], strides = [1, 1]} : vector<16x128xf32> to vector<1x128xf32>
    %4 = vector.extract_strided_slice %0 {offsets = [3, 0], sizes = [1, 64], strides = [1, 1]} : vector<16x128xf32> to vector<1x64xf32>
    %5 = vector.extract_strided_slice %0 {offsets = [4, 0], sizes = [1, 64], strides = [1, 1]} : vector<16x128xf32> to vector<1x64xf32>
    %6 = vector.extract_strided_slice %0 {offsets = [5, 0], sizes = [1, 64], strides = [1, 1]} : vector<16x128xf32> to vector<1x64xf32>
    %7 = vector.extract_strided_slice %0 {offsets = [6, 0], sizes = [1, 32], strides = [1, 1]} : vector<16x128xf32> to vector<1x32xf32>
    %8 = vector.extract_strided_slice %0 {offsets = [7, 0], sizes = [1, 32], strides = [1, 1]} : vector<16x128xf32> to vector<1x32xf32>
    %9 = vector.extract_strided_slice %0 {offsets = [8, 0], sizes = [1, 32], strides = [1, 1]} : vector<16x128xf32> to vector<1x32xf32>
    %10 = vector.extract_strided_slice %0 {offsets = [9, 0], sizes = [1, 128], strides = [1, 1]} : vector<16x128xf32> to vector<1x128xf32>
    %c0_1 = arith.constant 0 : index
    %c0_2 = arith.constant 0 : index
    %11 = vector.load %arg0[%c0_1, %c0_2] : memref<8x32xbf16, #tpu.memory_space<vmem>>, vector<8x32xbf16>
    %c0_3 = arith.constant 0 : index
    %c0_4 = arith.constant 0 : index
    %12 = vector.load %arg1[%c0_3, %c0_4] : memref<32x128xbf16, #tpu.memory_space<vmem>>, vector<32x128xbf16>
    %cst = arith.constant dense<0.000000e+00> : vector<8x128xf32>
    %13 = tpu.matmul %11, %12, %cst {dimension_numbers = #tpu.dot_dimension_numbers<[1], [0], [0], [1], [0, 0, 1, 1], [], []>} : vector<8x32xbf16>, vector<32x128xbf16>, vector<8x128xf32> -> vector<8x128xf32>
    %14 = vector.broadcast %1 : vector<1x128xf32> to vector<8x128xf32>
    %15 = arith.addf %13, %14 : vector<8x128xf32>
    %cst_5 = arith.constant 0.000000e+00 : f32
    %16 = vector.broadcast %cst_5 : f32 to vector<8x128xf32>
    %17 = arith.maximumf %15, %16 : vector<8x128xf32>
    %cst_6 = arith.constant dense<0.000000e+00> : vector<128xf32>
    %18 = vector.multi_reduction <add>, %17, %cst_6 [0] : vector<8x128xf32> to vector<128xf32>
    %19 = vector.shape_cast %18 : vector<128xf32> to vector<1x128xf32>
    %cst_7 = arith.constant 8.000000e+00 : f32
    %20 = vector.broadcast %cst_7 : f32 to vector<1x128xf32>
    %21 = arith.divf %19, %20 : vector<1x128xf32>
    %22 = arith.mulf %17, %17 : vector<8x128xf32>
    %cst_8 = arith.constant dense<0.000000e+00> : vector<128xf32>
    %23 = vector.multi_reduction <add>, %22, %cst_8 [0] : vector<8x128xf32> to vector<128xf32>
    %24 = vector.shape_cast %23 : vector<128xf32> to vector<1x128xf32>
    %cst_9 = arith.constant 8.000000e+00 : f32
    %25 = vector.broadcast %cst_9 : f32 to vector<1x128xf32>
    %26 = arith.divf %24, %25 : vector<1x128xf32>
    %27 = arith.mulf %21, %21 : vector<1x128xf32>
    %28 = arith.subf %26, %27 : vector<1x128xf32>
    %cst_10 = arith.constant 9.99999974E-6 : f32
    %29 = vector.broadcast %cst_10 : f32 to vector<1x128xf32>
    %30 = arith.addf %28, %29 : vector<1x128xf32>
    %31 = math.rsqrt %30 : vector<1x128xf32>
    %32 = arith.mulf %2, %31 : vector<1x128xf32>
    %33 = arith.mulf %21, %32 : vector<1x128xf32>
    %34 = arith.subf %3, %33 : vector<1x128xf32>
    %35 = vector.broadcast %32 : vector<1x128xf32> to vector<8x128xf32>
    %36 = arith.mulf %17, %35 : vector<8x128xf32>
    %37 = vector.broadcast %34 : vector<1x128xf32> to vector<8x128xf32>
    %38 = arith.addf %36, %37 : vector<8x128xf32>
    %39 = arith.truncf %38 : vector<8x128xf32> to vector<8x128xbf16>
    %c0_11 = arith.constant 0 : index
    %c0_12 = arith.constant 0 : index
    %40 = vector.load %arg2[%c0_11, %c0_12] : memref<128x64xbf16, #tpu.memory_space<vmem>>, vector<128x64xbf16>
    %cst_13 = arith.constant dense<0.000000e+00> : vector<8x64xf32>
    %41 = tpu.matmul %39, %40, %cst_13 {dimension_numbers = #tpu.dot_dimension_numbers<[1], [0], [0], [1], [0, 0, 1, 1], [], []>} : vector<8x128xbf16>, vector<128x64xbf16>, vector<8x64xf32> -> vector<8x64xf32>
    %42 = vector.broadcast %4 : vector<1x64xf32> to vector<8x64xf32>
    %43 = arith.addf %41, %42 : vector<8x64xf32>
    %cst_14 = arith.constant 0.000000e+00 : f32
    %44 = vector.broadcast %cst_14 : f32 to vector<8x64xf32>
    %45 = arith.maximumf %43, %44 : vector<8x64xf32>
    %cst_15 = arith.constant dense<0.000000e+00> : vector<64xf32>
    %46 = vector.multi_reduction <add>, %45, %cst_15 [0] : vector<8x64xf32> to vector<64xf32>
    %47 = vector.shape_cast %46 : vector<64xf32> to vector<1x64xf32>
    %cst_16 = arith.constant 8.000000e+00 : f32
    %48 = vector.broadcast %cst_16 : f32 to vector<1x64xf32>
    %49 = arith.divf %47, %48 : vector<1x64xf32>
    %50 = arith.mulf %45, %45 : vector<8x64xf32>
    %cst_17 = arith.constant dense<0.000000e+00> : vector<64xf32>
    %51 = vector.multi_reduction <add>, %50, %cst_17 [0] : vector<8x64xf32> to vector<64xf32>
    %52 = vector.shape_cast %51 : vector<64xf32> to vector<1x64xf32>
    %cst_18 = arith.constant 8.000000e+00 : f32
    %53 = vector.broadcast %cst_18 : f32 to vector<1x64xf32>
    %54 = arith.divf %52, %53 : vector<1x64xf32>
    %55 = arith.mulf %49, %49 : vector<1x64xf32>
    %56 = arith.subf %54, %55 : vector<1x64xf32>
    %cst_19 = arith.constant 9.99999974E-6 : f32
    %57 = vector.broadcast %cst_19 : f32 to vector<1x64xf32>
    %58 = arith.addf %56, %57 : vector<1x64xf32>
    %59 = math.rsqrt %58 : vector<1x64xf32>
    %60 = arith.mulf %5, %59 : vector<1x64xf32>
    %61 = arith.mulf %49, %60 : vector<1x64xf32>
    %62 = arith.subf %6, %61 : vector<1x64xf32>
    %63 = vector.broadcast %60 : vector<1x64xf32> to vector<8x64xf32>
    %64 = arith.mulf %45, %63 : vector<8x64xf32>
    %65 = vector.broadcast %62 : vector<1x64xf32> to vector<8x64xf32>
    %66 = arith.addf %64, %65 : vector<8x64xf32>
    %67 = arith.truncf %66 : vector<8x64xf32> to vector<8x64xbf16>
    %c0_20 = arith.constant 0 : index
    %c0_21 = arith.constant 0 : index
    %68 = vector.load %arg3[%c0_20, %c0_21] : memref<64x32xbf16, #tpu.memory_space<vmem>>, vector<64x32xbf16>
    %cst_22 = arith.constant dense<0.000000e+00> : vector<8x32xf32>
    %69 = tpu.matmul %67, %68, %cst_22 {dimension_numbers = #tpu.dot_dimension_numbers<[1], [0], [0], [1], [0, 0, 1, 1], [], []>} : vector<8x64xbf16>, vector<64x32xbf16>, vector<8x32xf32> -> vector<8x32xf32>
    %70 = vector.broadcast %7 : vector<1x32xf32> to vector<8x32xf32>
    %71 = arith.addf %69, %70 : vector<8x32xf32>
    %cst_23 = arith.constant 0.000000e+00 : f32
    %72 = vector.broadcast %cst_23 : f32 to vector<8x32xf32>
    %73 = arith.maximumf %71, %72 : vector<8x32xf32>
    %cst_24 = arith.constant dense<0.000000e+00> : vector<32xf32>
    %74 = vector.multi_reduction <add>, %73, %cst_24 [0] : vector<8x32xf32> to vector<32xf32>
    %75 = vector.shape_cast %74 : vector<32xf32> to vector<1x32xf32>
    %cst_25 = arith.constant 8.000000e+00 : f32
    %76 = vector.broadcast %cst_25 : f32 to vector<1x32xf32>
    %77 = arith.divf %75, %76 : vector<1x32xf32>
    %78 = arith.mulf %73, %73 : vector<8x32xf32>
    %cst_26 = arith.constant dense<0.000000e+00> : vector<32xf32>
    %79 = vector.multi_reduction <add>, %78, %cst_26 [0] : vector<8x32xf32> to vector<32xf32>
    %80 = vector.shape_cast %79 : vector<32xf32> to vector<1x32xf32>
    %cst_27 = arith.constant 8.000000e+00 : f32
    %81 = vector.broadcast %cst_27 : f32 to vector<1x32xf32>
    %82 = arith.divf %80, %81 : vector<1x32xf32>
    %83 = arith.mulf %77, %77 : vector<1x32xf32>
    %84 = arith.subf %82, %83 : vector<1x32xf32>
    %cst_28 = arith.constant 9.99999974E-6 : f32
    %85 = vector.broadcast %cst_28 : f32 to vector<1x32xf32>
    %86 = arith.addf %84, %85 : vector<1x32xf32>
    %87 = math.rsqrt %86 : vector<1x32xf32>
    %88 = arith.mulf %8, %87 : vector<1x32xf32>
    %89 = arith.mulf %77, %88 : vector<1x32xf32>
    %90 = arith.subf %9, %89 : vector<1x32xf32>
    %91 = vector.broadcast %88 : vector<1x32xf32> to vector<8x32xf32>
    %92 = arith.mulf %73, %91 : vector<8x32xf32>
    %93 = vector.broadcast %90 : vector<1x32xf32> to vector<8x32xf32>
    %94 = arith.addf %92, %93 : vector<8x32xf32>
    %95 = arith.truncf %94 : vector<8x32xf32> to vector<8x32xbf16>
    %c0_29 = arith.constant 0 : index
    %c0_30 = arith.constant 0 : index
    %96 = vector.load %arg4[%c0_29, %c0_30] : memref<32x128xbf16, #tpu.memory_space<vmem>>, vector<32x128xbf16>
    %cst_31 = arith.constant dense<0.000000e+00> : vector<8x128xf32>
    %97 = tpu.matmul %95, %96, %cst_31 {dimension_numbers = #tpu.dot_dimension_numbers<[1], [0], [0], [1], [0, 0, 1, 1], [], []>} : vector<8x32xbf16>, vector<32x128xbf16>, vector<8x128xf32> -> vector<8x128xf32>
    %98 = vector.broadcast %10 : vector<1x128xf32> to vector<8x128xf32>
    %99 = arith.addf %97, %98 : vector<8x128xf32>
    %c0_32 = arith.constant 0 : index
    %c0_33 = arith.constant 0 : index
    %100 = vector.load %arg6[%c0_32, %c0_33] : memref<8x128xf32, #tpu.memory_space<vmem>>, vector<8x128xf32>
    tpu.vector_store %arg6[%c0_32, %c0_33], %99 {strides = array<i32>} : memref<8x128xf32, #tpu.memory_space<vmem>>, vector<8x128xf32>,
    return
  }
}

</mosaic_0001>

<bundles_post_ra>
// kernel: baseline_linear1d_forward.1
= control target key start
LH: loop header
LB: loop body
LE: loop exit
PB: predicated region body
PF: predicated region fallthrough
CT: control target
= control target key end

     0   :  { %v610_v1 = vmov 0.0   ;;  %vm611_vm0 = vmmov 0   ;;  %vm48_vm1 = vcmask 261120   ;;  %s776_s0 = inlined_call_operand.vmem [shape: bf16[8,32], index: 0, kind: input, shape index: {}]   ;;  %s777_s1 = inlined_call_operand.vmem [shape: bf16[32,128], index: 1, kind: input, shape index: {}]   ;;  %s778_s2 = inlined_call_operand.vmem [shape: bf16[128,64], index: 2, kind: input, shape index: {}]   ;;  %s779_s3 = inlined_call_operand.vmem [shape: bf16[64,32], index: 3, kind: input, shape index: {}]   ;;  %s780_s4 = inlined_call_operand.vmem [shape: bf16[32,128], index: 4, kind: input, shape index: {}]   ;;  %s781_s5 = inlined_call_operand.vmem [shape: f32[16,128], index: 5, kind: input, shape index: {}]   ;;  %s782_s6 = inlined_call_operand.hbm [shape: f32[8,128], index: 6, kind: output, shape index: {}]  }
   0x1   :  { %v564_v0 = vld [vmem:[%s777_s1] sm:$0xff]   ;;  %513 = vmatprep.subr.bf16.mxu0 %v610_v1  ;;  %521 = vmatprep.subr.bf16.mxu1 %v610_v1  ;;  %v565_v2 = vld [vmem:[%s777_s1 + $0x8] sm:$0xff]  }
   0x2   :  { %514 = vmatpush3.bf16.msra.mxu0 %v564_v0  ;;  %517 = vmatprep.mubr.msk.bf16.mxu0 %vm611_vm0, %v610_v1  ;;  %v27_v3 = vld [vmem:[%s776_s0] sm:$0xf] }
   0x3   :  { %515 = vmatprep.subr.bf16.mxu0 %v610_v1  ;;  %537 = vmatprep.mubr.msk.bf16.mxu1 %vm611_vm0, %v610_v1 }
   0x6   :  { %516 = vmatpush3.bf16.msra.mxu0 %v565_v2 }
   0x7   :  { %541 = vmatprep.subr.bf16.mxu0 %v610_v1 }
   0x9   :  { %518 = vmatmul.mubr.msk.bf16.vlgmr.msra.gmra.mrb[0].mxu0 %vm48_vm1, %v27_v3 }
   0xa   :  { %549 = vmatprep.mubr.msk.bf16.mxu0 %vm611_vm0, %v610_v1 }
   0xb   :  { %11 = vsyncpa [#allocation3], 0  ;;  %v566_v4 = vld [vmem:[%s778_s2] sm:$0xff]   ;;  %v567_v5 = vld [vmem:[%s778_s2 + $0x8] sm:$0xff]   ;;  %v32_v12 = vlaneseq  ;;  %vm239_vm2 = vcmask 523264   ;;  %s612_s29 = smov [#allocation2]  }
   0xc   :  { %522 = vmatpush3.bf16.msra.mxu1 %v566_v4  ;;  %v568_v6 = vld [vmem:[%s778_s2 + $0x10] sm:$0xff]   ;;  %v569_v7 = vld [vmem:[%s778_s2 + $0x18] sm:$0xff]   ;;  %v570_v8 = vld [vmem:[%s778_s2 + $0x20] sm:$0xff]   ;;  %s466_s0 = sshll.u32 %s612_s29, 4  ;;  %s467_s0 = int_to_ptr.vmem [resolvable:$true] %s466_s0 }
   0xd   :  { %523 = vmatprep.subr.bf16.mxu1 %v610_v1  ;;  %v571_v9 = vld [vmem:[%s778_s2 + $0x28] sm:$0xff]   ;;  %v572_v10 = vld [vmem:[%s778_s2 + $0x30] sm:$0xff]   ;;  %v573_v11 = vld [vmem:[%s778_s2 + $0x38] sm:$0xff]   ;;  %v699_v13 = vshrl.u32 %v32_v12, 7  ;;  %p591_p1 = scmp.lt.s32.totalorder %s467_s0, %s467_s0 }
   0xe   :  { %v705_v15 = vld [vmem:[%s781_s5] sm:$0xff]  ;;  %v575_v54 = vld [vmem:[%s779_s3 + $0x8] sm:$0xff]   ;;  %v576_v55 = vld [vmem:[%s779_s3 + $0x10] sm:$0xff]  }
   0xf   :  { %v34_v14 = vsub.s32 0, %v699_v13  ;;  %v121_v43 = vsub.s32 1, %v699_v13  ;;  %v126_v47 = vsub.s32 2, %v699_v13  ;;  %v574_v53 = vld [vmem:[%s779_s3] sm:$0xff]   ;;  %v577_v56 = vld [vmem:[%s779_s3 + $0x18] sm:$0xff]   ;;  %v148_v57 = vsub.s32 3, %v699_v13 }
  0x10   :  { %524 = vmatpush3.bf16.msra.mxu1 %v567_v5  ;;  %542 = vmatpush3.bf16.msra.mxu0 %v574_v53 }
  0x11   :  { %525 = vmatprep.subr.bf16.mxu1 %v610_v1  ;;  %v35_v16 = vrot.slane %v705_v15, %v34_v14  ;;  %543 = vmatprep.subr.bf16.mxu0 %v610_v1  ;;  %v149_v58 = vrot.slane %v705_v15, %v148_v57 }
  0x14   :  { %526 = vmatpush3.bf16.msra.mxu1 %v568_v6  ;;  %544 = vmatpush3.bf16.msra.mxu0 %v575_v54 }
  0x15   :  { %527 = vmatprep.subr.bf16.mxu1 %v610_v1  ;;  %545 = vmatprep.subr.bf16.mxu0 %v610_v1 }
  0x18   :  { %528 = vmatpush3.bf16.msra.mxu1 %v569_v7  ;;  %546 = vmatpush3.bf16.msra.mxu0 %v576_v55 }
  0x19   :  { %529 = vmatprep.subr.bf16.mxu1 %v610_v1  ;;  %547 = vmatprep.subr.bf16.mxu0 %v610_v1 }
  0x1c   :  { %530 = vmatpush3.bf16.msra.mxu1 %v570_v8  ;;  %548 = vmatpush3.bf16.msra.mxu0 %v577_v56 }
  0x1d   :  { %531 = vmatprep.subr.bf16.mxu1 %v610_v1  ;;  %553 = vmatprep.subr.bf16.mxu0 %v610_v1 }
  0x20   :  { %532 = vmatpush3.bf16.msra.mxu1 %v571_v9 }
  0x21   :  { %533 = vmatprep.subr.bf16.mxu1 %v610_v1 }
  0x24   :  { %534 = vmatpush3.bf16.msra.mxu1 %v572_v10 }
  0x25   :  { %535 = vmatprep.subr.bf16.mxu1 %v610_v1 }
  0x28   :  { %536 = vmatpush3.bf16.msra.mxu1 %v573_v11 }
  0xdc   :  { %v86_v17 = vpop.f32.mrb[0].mxu0 }
  0xdd   :  { %v87_v18 = vadd.f32 %v86_v17, %v35_v16  ;;  %v519_v19 = vpop.f32.mrb[1].mxu0 }
  0xde   :  { %v89_v20 = vpop.f32.mrb[2].mxu0 }
  0xdf   :  { %v92_v21 = vmax.f32 %v87_v18, 0.0  ;;  %v520_v22 = vpop.f32.mrb[3].mxu0 }
  0xe1   :  { %v93_v23 = vrot.slane %v92_v21, 4  ;;  %v101_v24 = vmul.f32 %v92_v21, %v92_v21 }
  0xe3   :  { %v94_v25 = vadd.f32 %v93_v23, %v92_v21  ;;  %v102_v26 = vrot.slane %v101_v24, 4 }
  0xe5   :  { %v95_v27 = vrot.slane %v94_v25, 2  ;;  %v103_v28 = vadd.f32 %v102_v26, %v101_v24 }
  0xe7   :  { %v96_v29 = vadd.f32 %v95_v27, %v94_v25  ;;  %v104_v30 = vrot.slane %v103_v28, 2  ;;  %v269_v27 = vsub.s32 4, %v699_v13 }
  0xe9   :  { %v97_v31 = vrot.slane %v96_v29, 1  ;;  %v105_v32 = vadd.f32 %v104_v30, %v103_v28 }
  0xeb   :  { %v98_v33 = vadd.f32 %v97_v31, %v96_v29  ;;  %v106_v34 = vrot.slane %v105_v32, 1  ;;  %v274_v31 = vsub.s32 5, %v699_v13 }
  0xed   :  { %v107_v35 = vadd.f32 %v106_v34, %v105_v32  ;;  %v100_v36 = vmul.f32 0.125, %v98_v33 }
  0xef   :  { %v108_v37 = vmul.f32 0.125, %v107_v35  ;;  %v109_v38 = vmul.f32 %v100_v36, %v100_v36 }
  0xf1   :  { %v110_v39 = vsub.f32 %v108_v37, %v109_v38  ;;  %v578_v37 = vld [vmem:[%s780_s4] sm:$0xff]   ;;  %v579_v38 = vld [vmem:[%s780_s4 + $0x8] sm:$0xff]  }
  0xf3   :  { %v111_v40 = vadd.f32 1e-05, %v110_v39  ;;  %v288_v39 = vsub.s32 6, %v699_v13 }
  0xf5   :  { %580 = vrsqrt.f32 %v111_v40  ;;  %v289_v40 = vrot.slane %v705_v15, %v288_v39 }
  0xff   :  { %v581_v41 = vpop.eup %580 }
 0x100   :  { %v113_v42 = vmul.f32 %v581_v41, %v705_v15 }
 0x102   :  { %v114_v44 = vmul.f32 %v113_v42, %v100_v36  ;;  %v122_v46 = vrot.slane %v113_v42, %v121_v43 }
 0x104   :  { %v116_v45 = vrot.slane %v114_v44, 7  ;;  %v123_v49 = vmul.f32 %v122_v46, %v92_v21 }
 0x106   :  { %v118_v48 = vsub.f32 %v705_v15, %v116_v45 }
 0x108   :  { %v127_v50 = vrot.slane %v118_v48, %v126_v47 }
 0x10a   :  { %v128_v51 = vadd.f32 %v127_v50, %v123_v49 }
 0x10c   :  { %v129_v52 = vpack.c.bf16 %v128_v51, %v128_v51 }
 0x10e   :  { %538 = vmatmul.mubr.bf16.vlgmr.msra.gmra.mrb[0].mxu1 %v129_v52 }
 0x1e1   :  { %v232_v59 = vpop.f32.mrb[0].mxu1 }
 0x1e2   :  { %v233_v60 = vadd.f32 %v232_v59, %v149_v58  ;;  %v539_v61 = vpop.f32.mrb[1].mxu1 }
 0x1e3   :  { %v235_v62 = vpop.f32.mrb[2].mxu1 }
 0x1e4   :  { %v238_v63 = vmax.f32 %v233_v60, 0.0  ;;  %v540_v0 = vpop.f32.mrb[3].mxu1 }
 0x1e6   :  { %v240_v2 = vsel %vm239_vm2, %v238_v63, 0.0  ;;  %v248_v3 = vmul.f32 %v238_v63, %v238_v63 }
 0x1e7   :  { %v241_v4 = vrot.slane %v240_v2, 4 }
 0x1e8   :  { %v249_v5 = vsel %vm239_vm2, %v248_v3, 0.0 }
 0x1e9   :  { %v242_v6 = vadd.f32 %v241_v4, %v240_v2  ;;  %v250_v7 = vrot.slane %v249_v5, 4 }
 0x1eb   :  { %v243_v8 = vrot.slane %v242_v6, 2  ;;  %v251_v9 = vadd.f32 %v250_v7, %v249_v5 }
 0x1ed   :  { %v244_v10 = vadd.f32 %v243_v8, %v242_v6  ;;  %v252_v11 = vrot.slane %v251_v9, 2  ;;  %v387_v6 = vsub.s32 7, %v699_v13  ;;  %v26_v8 = vld [vmem:[%s781_s5 + $0x8] sm:$0xff]  ;;  %s586_s5 = scalar_lea.vmem %s467_s0, 128 }
 0x1ee   :  { %p587_p0 = scmp.ne.s32.totalorder %s467_s0, %s586_s5  ;;  %p592_p2 = scmp.lt.s32.totalorder %s586_s5, %s586_s5 }
 0x1ef   :  { %v245_v12 = vrot.slane %v244_v10, 1  ;;  %v253_v16 = vadd.f32 %v252_v11, %v251_v9 }
 0x1f0   :  { %p593_p3 = por %p592_p2, %p591_p1 }
 0x1f1   :  { %v246_v17 = vadd.f32 %v245_v12, %v244_v10  ;;  %v254_v18 = vrot.slane %v253_v16, 1 }
 0x1f2   :  { %p594_p4 = pnand %p593_p3, %p587_p0 }
 0x1f3   :  { %v247_v19 = vmul.f32 0.125, %v246_v17  ;;  %v255_v20 = vadd.f32 %v254_v18, %v253_v16 }
 0x1f5   :  { %v256_v21 = vmul.f32 0.125, %v255_v20  ;;  %v257_v22 = vmul.f32 %v247_v19, %v247_v19 }
 0x1f7   :  { %v258_v23 = vsub.f32 %v256_v21, %v257_v22 }
 0x1f9   :  { %v259_v24 = vadd.f32 1e-05, %v258_v23 }
 0x1fb   :  { %582 = vrsqrt.f32 %v259_v24 }
 0x205   :  { %v583_v25 = vpop.eup %582 }
 0x206   :  { %v261_v26 = vmul.f32 %v583_v25, %v705_v15 }
 0x208   :  { %v262_v28 = vmul.f32 %v261_v26, %v247_v19  ;;  %v270_v30 = vrot.slane %v261_v26, %v269_v27 }
 0x20a   :  { %v264_v29 = vrot.slane %v262_v28, 7  ;;  %v271_v33 = vmul.f32 %v270_v30, %v238_v63 }
 0x20c   :  { %v266_v32 = vsub.f32 %v705_v15, %v264_v29 }
 0x20e   :  { %v275_v34 = vrot.slane %v266_v32, %v274_v31 }
 0x210   :  { %v276_v35 = vadd.f32 %v275_v34, %v271_v33 }
 0x212   :  { %v277_v36 = vpack.c.bf16 %v276_v35, %v276_v35 }
 0x214   :  { %550 = vmatmul.mubr.msk.bf16.vlgmr.msra.gmra.mrb[4].mxu0 %vm239_vm2, %v277_v36 }
 0x215   :  { %557 = vmatprep.mubr.msk.bf16.mxu0 %vm611_vm0, %v610_v1  ;;  %554 = vmatpush3.bf16.msra.mxu0 %v578_v37 }
 0x216   :  { %555 = vmatprep.subr.bf16.mxu0 %v610_v1 }
 0x219   :  { %556 = vmatpush3.bf16.msra.mxu0 %v579_v38 }
 0x2e7   :  { %v351_v41 = vpop.f32.mrb[4].mxu0 }
 0x2e8   :  { %v352_v42 = vadd.f32 %v351_v41, %v289_v40  ;;  %v551_v44 = vpop.f32.mrb[5].mxu0 }
 0x2e9   :  { %v354_v45 = vpop.f32.mrb[6].mxu0 }
 0x2ea   :  { %v357_v46 = vmax.f32 %v352_v42, 0.0  ;;  %v552_v47 = vpop.f32.mrb[7].mxu0 }
 0x2ec   :  { %v358_v48 = vsel %vm48_vm1, %v357_v46, 0.0  ;;  %v366_v49 = vmul.f32 %v357_v46, %v357_v46 }
 0x2ed   :  { %v359_v50 = vrot.slane %v358_v48, 4 }
 0x2ee   :  { %v367_v1 = vsel %vm48_vm1, %v366_v49, 0.0 }
 0x2ef   :  { %v360_v51 = vadd.f32 %v359_v50, %v358_v48  ;;  %v368_v52 = vrot.slane %v367_v1, 4 }
 0x2f1   :  { %v361_v53 = vrot.slane %v360_v51, 2  ;;  %v369_v54 = vadd.f32 %v368_v52, %v367_v1 }
 0x2f3   :  { %v362_v55 = vadd.f32 %v361_v53, %v360_v51  ;;  %v370_v56 = vrot.slane %v369_v54, 2 }
 0x2f5   :  { %v363_v57 = vrot.slane %v362_v55, 1  ;;  %v371_v58 = vadd.f32 %v370_v56, %v369_v54 }
 0x2f7   :  { %v364_v59 = vadd.f32 %v363_v57, %v362_v55  ;;  %v372_v60 = vrot.slane %v371_v58, 1 }
 0x2f9   :  { %v365_v61 = vmul.f32 0.125, %v364_v59  ;;  %v373_v62 = vadd.f32 %v372_v60, %v371_v58 }
 0x2fb   :  { %v374_v63 = vmul.f32 0.125, %v373_v62  ;;  %v375_v0 = vmul.f32 %v365_v61, %v365_v61 }
 0x2fd   :  { %v376_v2 = vsub.f32 %v374_v63, %v375_v0 }
 0x2ff   :  { %v377_v3 = vadd.f32 1e-05, %v376_v2 }
 0x301   :  { %584 = vrsqrt.f32 %v377_v3 }
 0x30b   :  { %v585_v4 = vpop.eup %584 }
 0x30c   :  { %v379_v5 = vmul.f32 %v585_v4, %v705_v15  ;;  %v403_v15 = vrot.slane %v26_v8, %v121_v43 }
 0x30e   :  { %v380_v7 = vmul.f32 %v379_v5, %v365_v61  ;;  %v388_v10 = vrot.slane %v379_v5, %v387_v6 }
 0x310   :  { %v382_v9 = vrot.slane %v380_v7, 7  ;;  %v389_v12 = vmul.f32 %v388_v10, %v357_v46 }
 0x312   :  { %v384_v11 = vsub.f32 %v26_v8, %v382_v9 }
 0x314   :  { %v393_v16 = vrot.slane %v384_v11, %v34_v14 }
 0x316   :  { %v394_v17 = vadd.f32 %v393_v16, %v389_v12 }
 0x318   :  { %v395_v18 = vpack.c.bf16 %v394_v17, %v394_v17 }
 0x31a   :  { %558 = vmatmul.mubr.msk.bf16.vlgmr.msra.gmra.mrb[8].mxu0 %vm48_vm1, %v395_v18 }
 0x3ed   :  { %v453_v19 = vpop.f32.mrb[8].mxu0 }
 0x3ee   :  { %v454_v20 = vadd.f32 %v453_v19, %v403_v15  ;;  %v559_v21 = vpop.f32.mrb[9].mxu0 }
 0x3ef   :  { %v456_v22 = vpop.f32.mrb[10].mxu0 }
 0x3f0   :  { %459 = vst [vmem:[#allocation2] sm:$0xff] %v454_v20  ;;  %v560_v23 = vpop.f32.mrb[11].mxu0 }
 0x3f1   :  { %597 = shalt.err (!%p594_p4)
}
 0x3f2   :  { %s598_s8 = scalar_lea.hbm %s782_s6, 128 }
 0x3f3   :  { %p599_p5 = scmp.ne.s32.totalorder %s782_s6, %s598_s8  ;;  %p602_p6 = scmp.lt.u32.totalorder %s598_s8, %s782_s6 }
 0x3f5   :  { %p604_p7 = pnand %p602_p6, %p599_p5 }
 0x3f7   :  { %607 = shalt.err (!%p604_p7)
}
 0x3f8   :  { %469 = dma.vmem_to_hbm [thread:$0]  %s467_s0, 128, %s782_s6, [#allocation3]  }
 0x3f9   :  { %608 = dma.done.wait [#allocation3], 128  }
 0x3fa   :  { %609 = vsyncadd [#allocation3], 4294967168 }
 0x3fb   :  { %473 = vsyncpa [#allocation3], 1 }

</bundles_post_ra>
